<compile_context>
chip_gen: v5e
topology: v5e:2x2
jax: 0.10.0
libtpu: 0.0.40
codegen_flags: <defaults>
</compile_context>

<pallas_src>
import functools
import math

import jax
import jax.numpy as jnp
from jax import lax
from jax.experimental import pallas as pl
from jax.experimental.pallas import tpu as pltpu


def _round_up(x, m):
    return ((x + m - 1) // m) * m


def _choose_tiling(n, c, itemsize):
    """Pick a row-tile size so the double-buffered (TILE_N, C) input stays
    well inside the default scoped-VMEM budget (safe on v7x's smaller VMEM)."""
    per_buffer_budget = 8 * 1024 * 1024          # bytes per pipeline buffer
    tile_n = per_buffer_budget // max(1, c * itemsize)
    tile_n = int(min(tile_n, 512))
    tile_n = max(8, (tile_n // 8) * 8)           # sublane multiple
    n8 = _round_up(n, 8)
    if tile_n >= n8:
        return n8, n8                            # single tile covers everything
    return tile_n, _round_up(n, tile_n)


# ---------------------------------------------------------------------------
# Phase 1: per-sample cross-entropy + hoisted adaptive margin.
# ---------------------------------------------------------------------------
def _loss_pass_kernel(out_ref, tgt_ref, loss_ref, wgt_ref, *,
                      use_features, base_margin, adapt_rate):
    logits = out_ref[...].astype(jnp.float32)               # (TILE_N, C)
    tn, c = logits.shape
    tgt = tgt_ref[...]                                       # (TILE_N, 1) int32

    # stable log-sum-exp along lanes (class axis)
    max_logit = jnp.max(logits, axis=-1, keepdims=True)      # (TILE_N, 1)
    sum_exp = jnp.sum(jnp.exp(logits - max_logit), axis=-1, keepdims=True)
    lse = max_logit + jnp.log(sum_exp)                       # (TILE_N, 1)

    class_ids = lax.broadcasted_iota(jnp.int32, (tn, c), 1)
    target_logit = jnp.sum(jnp.where(class_ids == tgt, logits, 0.0),
                           axis=-1, keepdims=True)           # (TILE_N, 1)
    losses = lse - target_logit                              # (TILE_N, 1)

    if use_features:
        confidence = jnp.exp(max_logit - lse)                # max softmax prob
        margin = base_margin * (1.0 + adapt_rate * (1.0 - confidence))
        weighted = losses * margin
    else:
        weighted = losses

    loss_ref[...] = losses
    wgt_ref[...] = weighted


# ---------------------------------------------------------------------------
# Phase 2: top-k selection + mean over lane-dense (1, N_pad) vectors.
# ---------------------------------------------------------------------------
def _topk_mean_kernel(loss_ref, wgt_ref, out_ref, *, k, n_valid):
    loss_row = loss_ref[...]                                 # (1, N_pad) f32
    wgt_row = wgt_ref[...]                                   # (1, N_pad) f32
    n_pad = loss_row.shape[-1]

    idx = lax.broadcasted_iota(jnp.int32, (1, n_pad), 1)
    valid = idx < n_valid
    cur0 = jnp.where(valid, loss_row, -jnp.inf)              # padded rows never win
    wgt = jnp.where(valid, wgt_row, 0.0)

    def step(carry):
        cur, acc = carry
        m = jnp.max(cur, axis=-1, keepdims=True)             # worst remaining loss
        pick = jnp.min(jnp.where(cur == m, idx, n_pad),      # first index on ties
                       axis=-1, keepdims=True)
        sel = idx == pick
        acc = acc + jnp.sum(jnp.where(sel, wgt, 0.0), axis=-1, keepdims=True)
        cur = jnp.where(sel, -jnp.inf, cur)
        return cur, acc

    acc0 = jnp.zeros((1, 1), jnp.float32)
    if k <= 8:
        carry = (cur0, acc0)
        for _ in range(k):                                   # compile-time unroll
            carry = step(carry)
        _, acc = carry
    else:
        _, acc = lax.fori_loop(0, k, lambda _, c: step(c), (cur0, acc0))

    out_ref[0, 0] = (acc * (1.0 / k))[0, 0]


# ---------------------------------------------------------------------------
# Wrapper.
# ---------------------------------------------------------------------------
def cvar_dro_loss(outputs, targets, features=None, *, alpha=0.1,
                  base_margin=1.0, adapt_rate=0.3):
    """Pallas implementation of CVaRDROLoss.forward."""
    n, c = outputs.shape
    k = max(1, int(math.ceil(n * alpha)))
    use_features = features is not None

    tile_n, n_pad = _choose_tiling(n, c, outputs.dtype.itemsize)
    num_tiles = n_pad // tile_n

    targets_i32 = targets.astype(jnp.int32)
    if n_pad != n:
        outputs_p = jnp.pad(outputs, ((0, n_pad - n), (0, 0)))
        targets_p = jnp.pad(targets_i32, (0, n_pad - n))
    else:
        outputs_p, targets_p = outputs, targets_i32
    targets_p = targets_p.reshape(n_pad, 1)

    loss_col, wgt_col = pl.pallas_call(
        functools.partial(
            _loss_pass_kernel,
            use_features=use_features,
            base_margin=float(base_margin),
            adapt_rate=float(adapt_rate),
        ),
        grid=(num_tiles,),
        in_specs=[
            pl.BlockSpec((tile_n, c), lambda i: (i, 0)),
            pl.BlockSpec((tile_n, 1), lambda i: (i, 0)),
        ],
        out_specs=[
            pl.BlockSpec((tile_n, 1), lambda i: (i, 0)),
            pl.BlockSpec((tile_n, 1), lambda i: (i, 0)),
        ],
        out_shape=[
            jax.ShapeDtypeStruct((n_pad, 1), jnp.float32),
            jax.ShapeDtypeStruct((n_pad, 1), jnp.float32),
        ],
        compiler_params=pltpu.CompilerParams(
            dimension_semantics=("parallel",)),
    )(outputs_p, targets_p)

    # (N_pad, 1) -> (1, N_pad) is a free, layout-preserving reshape (row-major
    # contiguous), presenting lane-dense selection vectors to the finalize.
    loss_row = loss_col.reshape(1, n_pad)
    wgt_row = wgt_col.reshape(1, n_pad)

    out = pl.pallas_call(
        functools.partial(_topk_mean_kernel, k=k, n_valid=n),
        in_specs=[
            pl.BlockSpec(memory_space=pltpu.MemorySpace.VMEM),
            pl.BlockSpec(memory_space=pltpu.MemorySpace.VMEM),
        ],
        out_specs=pl.BlockSpec(memory_space=pltpu.MemorySpace.SMEM),
        out_shape=jax.ShapeDtypeStruct((1, 1), jnp.float32),
    )(loss_row, wgt_row)
    return out[0, 0]


def _reference(outputs, targets, features, *, alpha, base_margin, adapt_rate):
    """Pure-JAX reference mirroring the PyTorch forward."""
    n = outputs.shape[0]
    logz = jax.scipy.special.logsumexp(outputs, axis=1)
    losses = logz - outputs[jnp.arange(n), targets]
    k = max(1, int(math.ceil(n * alpha)))
    worst, idx = lax.top_k(losses, k)
    if features is not None:
        probs = jax.nn.softmax(outputs, axis=1)
        conf = jnp.max(probs, axis=1)
        unc = 1.0 - conf
        worst = worst * (base_margin * (1.0 + adapt_rate * unc[idx]))
    return jnp.mean(worst)


if __name__ == "__main__":
    key = jax.random.PRNGKey(0)
    k1, k2, k3 = jax.random.split(key, 3)

    N, C, F = 16, 32, 8
    outputs = jax.random.normal(k1, (N, C), dtype=jnp.float32)
    targets = jax.random.randint(k2, (N,), 0, C, dtype=jnp.int32)
    features = jax.random.normal(k3, (N, F), dtype=jnp.float32)  # presence only

    # with features (adaptive-margin branch)
    loss = jax.block_until_ready(cvar_dro_loss(outputs, targets, features))
    ref = _reference(outputs, targets, features,
                     alpha=0.1, base_margin=1.0, adapt_rate=0.3)
    assert jnp.allclose(loss, ref, rtol=1e-5, atol=1e-5), (loss, ref)

    # without features (plain CVaR branch)
    loss_nf = jax.block_until_ready(cvar_dro_loss(outputs, targets, None))
    ref_nf = _reference(outputs, targets, None,
                        alpha=0.1, base_margin=1.0, adapt_rate=0.3)
    assert jnp.allclose(loss_nf, ref_nf, rtol=1e-5, atol=1e-5), (loss_nf, ref_nf)

    print("KERNEL_OK")
</pallas_src>

<mosaic_0001>
module attributes {stable_mosaic.version = 11 : i64} {
  func.func @_loss_pass_kernel(%arg0: i32, %arg1: memref<16x32xf32, #tpu.memory_space<vmem>>, %arg2: memref<16x1xi32, #tpu.memory_space<vmem>>, %arg3: memref<16x1xf32, #tpu.memory_space<vmem>>, %arg4: memref<16x1xf32, #tpu.memory_space<vmem>>) attributes {dimension_semantics = [#tpu.dimension_semantics<parallel>], iteration_bounds = array<i64: 1>, scalar_prefetch = 0 : i64, scratch_operands = 0 : i64, tpu.core_type = #tpu.core_type<tc>, window_params = [{transform_indices = @transform_0, window_bounds = array<i64: 16, 32>}, {transform_indices = @transform_1, window_bounds = array<i64: 16, 1>}, {transform_indices = @transform_2, window_bounds = array<i64: 16, 1>}, {transform_indices = @transform_3, window_bounds = array<i64: 16, 1>}]} {
    %c0 = arith.constant 0 : index
    %c0_0 = arith.constant 0 : index
    %0 = vector.load %arg1[%c0, %c0_0] : memref<16x32xf32, #tpu.memory_space<vmem>>, vector<16x32xf32>
    %c0_1 = arith.constant 0 : index
    %c0_2 = arith.constant 0 : index
    %1 = vector.load %arg2[%c0_1, %c0_2] : memref<16x1xi32, #tpu.memory_space<vmem>>, vector<16x1xi32>
    %cst = arith.constant dense<0xFF800000> : vector<16xf32>
    %2 = vector.multi_reduction <maximumf>, %0, %cst [1] : vector<16x32xf32> to vector<16xf32>
    %3 = vector.shape_cast %2 : vector<16xf32> to vector<16x1xf32>
    %4 = vector.broadcast %3 : vector<16x1xf32> to vector<16x32xf32>
    %5 = arith.subf %0, %4 : vector<16x32xf32>
    %6 = math.exp %5 : vector<16x32xf32>
    %cst_3 = arith.constant dense<0.000000e+00> : vector<16xf32>
    %7 = vector.multi_reduction <add>, %6, %cst_3 [1] : vector<16x32xf32> to vector<16xf32>
    %8 = vector.shape_cast %7 : vector<16xf32> to vector<16x1xf32>
    %9 = math.log %8 : vector<16x1xf32>
    %10 = arith.addf %3, %9 : vector<16x1xf32>
    %11 = tpu.iota {dimensions = array<i32: 1>} : vector<16x32xi32>
    %12 = vector.broadcast %1 : vector<16x1xi32> to vector<16x32xi32>
    %13 = arith.cmpi eq, %11, %12 : vector<16x32xi32>
    %cst_4 = arith.constant 0.000000e+00 : f32
    %14 = vector.broadcast %cst_4 : f32 to vector<16x32xf32>
    %15 = arith.select %13, %0, %14 : vector<16x32xi1>, vector<16x32xf32>
    %cst_5 = arith.constant dense<0.000000e+00> : vector<16xf32>
    %16 = vector.multi_reduction <add>, %15, %cst_5 [1] : vector<16x32xf32> to vector<16xf32>
    %17 = vector.shape_cast %16 : vector<16xf32> to vector<16x1xf32>
    %18 = arith.subf %10, %17 : vector<16x1xf32>
    %19 = arith.subf %3, %10 : vector<16x1xf32>
    %20 = math.exp %19 : vector<16x1xf32>
    %cst_6 = arith.constant 1.000000e+00 : f32
    %21 = vector.broadcast %cst_6 : f32 to vector<16x1xf32>
    %22 = arith.subf %21, %20 : vector<16x1xf32>
    %cst_7 = arith.constant 3.000000e-01 : f32
    %23 = vector.broadcast %cst_7 : f32 to vector<16x1xf32>
    %24 = arith.mulf %23, %22 : vector<16x1xf32>
    %cst_8 = arith.constant 1.000000e+00 : f32
    %25 = vector.broadcast %cst_8 : f32 to vector<16x1xf32>
    %26 = arith.addf %25, %24 : vector<16x1xf32>
    %cst_9 = arith.constant 1.000000e+00 : f32
    %27 = vector.broadcast %cst_9 : f32 to vector<16x1xf32>
    %28 = arith.mulf %27, %26 : vector<16x1xf32>
    %29 = arith.mulf %18, %28 : vector<16x1xf32>
    %c0_10 = arith.constant 0 : index
    %c0_11 = arith.constant 0 : index
    %30 = vector.load %arg3[%c0_10, %c0_11] : memref<16x1xf32, #tpu.memory_space<vmem>>, vector<16x1xf32>
    tpu.vector_store %arg3[%c0_10, %c0_11], %18 {strides = array<i32>} : memref<16x1xf32, #tpu.memory_space<vmem>>, vector<16x1xf32>,
    %c0_12 = arith.constant 0 : index
    %c0_13 = arith.constant 0 : index
    %31 = vector.load %arg4[%c0_12, %c0_13] : memref<16x1xf32, #tpu.memory_space<vmem>>, vector<16x1xf32>
    tpu.vector_store %arg4[%c0_12, %c0_13], %29 {strides = array<i32>} : memref<16x1xf32, #tpu.memory_space<vmem>>, vector<16x1xf32>,
    return
  }
  func.func @transform_0(%arg0: i32) -> (i32, i32) {
    %c0_i32 = arith.constant 0 : i32
    %c0_i32_0 = arith.constant 0 : i32
    return %arg0, %c0_i32 : i32, i32
  }
  func.func @transform_1(%arg0: i32) -> (i32, i32) {
    %c0_i32 = arith.constant 0 : i32
    %c0_i32_0 = arith.constant 0 : i32
    return %arg0, %c0_i32 : i32, i32
  }
  func.func @transform_2(%arg0: i32) -> (i32, i32) {
    %c0_i32 = arith.constant 0 : i32
    %c0_i32_0 = arith.constant 0 : i32
    return %arg0, %c0_i32 : i32, i32
  }
  func.func @transform_3(%arg0: i32) -> (i32, i32) {
    %c0_i32 = arith.constant 0 : i32
    %c0_i32_0 = arith.constant 0 : i32
    return %arg0, %c0_i32 : i32, i32
  }
}

</mosaic_0001>

<bundles_post_ra>
// kernel: tpu_custom_call.1
= control target key start
LH: loop header
LB: loop body
LE: loop exit
PB: predicated region body
PF: predicated region fallthrough
CT: control target
= control target key end

     0   :  { %vm17_vm0 = vcmask 261120   ;;  %v104_v1 = vmov 0   ;;  %v42_v7 = vlaneseq  ;;  %vm76_vm3 = vcmask 7168   ;;  %s159_s0 = inlined_call_operand.vmem [shape: f32[16,32], index: 0, kind: input, shape index: {}]   ;;  %s160_s1 = inlined_call_operand.vmem [shape: s32[16,1], index: 1, kind: input, shape index: {}]   ;;  %s161_s2 = inlined_call_operand.vmem [shape: f32[16,1], index: 2, kind: output, shape index: {0}]   ;;  %s162_s3 = inlined_call_operand.vmem [shape: f32[16,1], index: 3, kind: output, shape index: {1}]  }
   0x1   :  { %v13_v0 = vld [vmem:[%s159_s0] sm:$0xff]  ;;  %90 = vset.pattern.permute.xlu1 %v104_v1  ;;  %91 = vset.pattern.permute.xlu0 %v104_v1  ;;  %v14_v4 = vld [vmem:[%s159_s0 + $0x8] sm:$0xff] }
   0x2   :  { %v15_v2 = vld [vmem:[%s160_s1] sm:$0xff]  ;;  %v18_v3 = vsel %vm17_vm0, %v13_v0, -inf  ;;  %v16_v5 = vld [vmem:[%s160_s1 + $0x8] sm:$0xff]  ;;  %v21_v6 = vsel %vm17_vm0, %v14_v4, -inf  ;;  %v43_v8 = vand.u32 127, %v42_v7 }
   0x3   :  { %45 = vperm.xlu1 %90, %v15_v2   ;;  %19 = vmax.xlane.f32.xlu0 %v18_v3 }
   0xb   :  { %48 = vperm.xlu1 %90, %v16_v5   ;;  %22 = vmax.xlane.f32.xlu0 %v21_v6 }
  0x75   :  { %v46_v9 = vpop.permute.xlu1 %45 }
  0x76   :  { %vm50_vm1 = vcmp.eq.s32.totalorder %v43_v8, %v46_v9  ;;  %v20_v10 = vpop.xlane.xlu0 %19 }
  0x77   :  { %v52_v11 = vsel %vm50_vm1, %v13_v0, 0.0  ;;  %v24_v12 = vsub.f32 %v13_v0, %v20_v10 }
  0x78   :  { %v54_v13 = vsel %vm17_vm0, %v52_v11, 0.0 }
  0x79   :  { %55 = vadd.xlane.f32.xlu0 %v54_v13  ;;  %v26_v14 = vmul.f32 1.442695, %v24_v12 }
  0x7b   :  { %92 = vpow2.f32 %v26_v14 }
  0x7d   :  { %v49_v15 = vpop.permute.xlu1 %48 }
  0x7e   :  { %vm51_vm2 = vcmp.eq.s32.totalorder %v43_v8, %v49_v15  ;;  %v23_v16 = vpop.xlane.xlu0 %22 }
  0x7f   :  { %v53_v17 = vsel %vm51_vm2, %v14_v4, 0.0  ;;  %v25_v18 = vsub.f32 %v14_v4, %v23_v16 }
  0x80   :  { %v57_v19 = vsel %vm17_vm0, %v53_v17, 0.0 }
  0x81   :  { %58 = vadd.xlane.f32.xlu1 %v57_v19  ;;  %v93_v20 = vpop.eup %92  ;;  %v28_v21 = vmul.f32 1.442695, %v25_v18 }
  0x82   :  { %v30_v22 = vsel %vm17_vm0, %v93_v20, 0.0 }
  0x83   :  { %94 = vpow2.f32 %v28_v21  ;;  %31 = vadd.xlane.f32.xlu2 %v30_v22 }
  0x89   :  { %v95_v23 = vpop.eup %94 }
  0x8a   :  { %v33_v24 = vsel %vm17_vm0, %v95_v23, 0.0 }
  0x8b   :  { %34 = vadd.xlane.f32.xlu2 %v33_v24 }
  0xec   :  { %v56_v29 = vpop.xlane.xlu0 %55 }
  0xf4   :  { %v59_v36 = vpop.xlane.xlu1 %58 }
  0xf6   :  { %v32_v25 = vpop.xlane.xlu2 %31 }
  0xf7   :  { %96 = vlog2.f32 %v32_v25 }
  0xfd   :  { %v97_v26 = vpop.eup %96 }
  0xfe   :  { %v37_v27 = vmul.f32 0.6931472, %v97_v26  ;;  %v35_v28 = vpop.xlane.xlu2 %34 }
  0xff   :  { %98 = vlog2.f32 %v35_v28 }
 0x100   :  { %v40_v30 = vadd.f32 %v37_v27, %v20_v10 }
 0x102   :  { %v62_v31 = vsub.f32 %v20_v10, %v40_v30  ;;  %v60_v32 = vsub.f32 %v40_v30, %v56_v29 }
 0x104   :  { %v64_v33 = vmul.f32 1.442695, %v62_v31  ;;  %77 = vst.msk [vmem:[%s161_s2] sm:$0xff] %vm76_vm3, %v60_v32 }
 0x105   :  { %v99_v34 = vpop.eup %98 }
 0x106   :  { %v39_v35 = vmul.f32 0.6931472, %v99_v34  ;;  %100 = vpow2.f32 %v64_v33 }
 0x108   :  { %v41_v37 = vadd.f32 %v39_v35, %v23_v16 }
 0x10a   :  { %v61_v38 = vsub.f32 %v41_v37, %v59_v36  ;;  %v63_v39 = vsub.f32 %v23_v16, %v41_v37 }
 0x10c   :  { %v101_v40 = vpop.eup %100  ;;  %v66_v41 = vmul.f32 1.442695, %v63_v39  ;;  %78 = vst.msk [vmem:[%s161_s2 + $0x8] sm:$0xff] %vm76_vm3, %v61_v38 }
 0x10d   :  { %v68_v42 = vsub.f32 1.0, %v101_v40 }
 0x10e   :  { %102 = vpow2.f32 %v66_v41 }
 0x10f   :  { %v70_v43 = vmul.f32 0.3, %v68_v42 }
 0x111   :  { %v72_v44 = vadd.f32 1.0, %v70_v43 }
 0x113   :  { %v74_v45 = vmul.f32 %v72_v44, %v60_v32 }
 0x114   :  { %v103_v46 = vpop.eup %102 }
 0x115   :  { %79 = vst.msk [vmem:[%s162_s3] sm:$0xff] %vm76_vm3, %v74_v45  ;;  %v69_v47 = vsub.f32 1.0, %v103_v46 }
 0x117   :  { %v71_v48 = vmul.f32 0.3, %v69_v47 }
 0x119   :  { %v73_v49 = vadd.f32 1.0, %v71_v48 }
 0x11b   :  { %v75_v50 = vmul.f32 %v73_v49, %v61_v38 }
 0x11d   :  { %80 = vst.msk [vmem:[%s162_s3 + $0x8] sm:$0xff] %vm76_vm3, %v75_v50 }

</bundles_post_ra>
